<compile_context>
chip_gen: v7x
topology: tpu7x:2x2x1
jax: 0.10.0
libtpu: 0.0.40
codegen_flags: <defaults>
</compile_context>

<pallas_src>
import functools

import jax
import jax.numpy as jnp
from jax.experimental import pallas as pl
from jax.experimental.pallas import tpu as pltpu

_IN = 28 * 28      # 784
_H1 = 128
_H2 = 64
_OUT = 10
_PAD = 128         # lane width: fc2/fc3 dims padded to this


def _round_up(x, m):
    return ((x + m - 1) // m) * m


def _mlp_kernel(x_ref, w1_ref, b1_ref, w2_ref, b2_ref, w3_ref, b3_ref, o_ref):
    x = x_ref[...]                                                    # [TB, 784] bf16

    # fc1 + relu   (dropout(p=0.2) is identity at inference time)
    # TODO(synk): training-mode dropout (pltpu.prng_random_bits mask) not emitted; eval semantics used.
    h1 = jnp.dot(x, w1_ref[...], preferred_element_type=jnp.float32) + b1_ref[...]
    h1 = jnp.maximum(h1, 0.0).astype(jnp.bfloat16)                    # [TB, 128]

    # fc2 + relu  (output cols 64:128 are zero-padded -> relu(0)=0, harmless)
    h2 = jnp.dot(h1, w2_ref[...], preferred_element_type=jnp.float32) + b2_ref[...]
    h2 = jnp.maximum(h2, 0.0).astype(jnp.bfloat16)                    # [TB, 128]

    # fc3 (input rows 64:128 and output cols 10:128 of W3 are zero)
    logits = jnp.dot(h2, w3_ref[...], preferred_element_type=jnp.float32) + b3_ref[...]  # [TB,128] f32

    # exclude padded logit columns from the softmax normalizer
    col = jax.lax.broadcasted_iota(jnp.int32, logits.shape, 1)
    logits = jnp.where(col < _OUT, logits, jnp.float32(-1e30))

    # numerically stable log_softmax over dim=1, lane-dense f32 store
    m = jnp.max(logits, axis=-1, keepdims=True)
    shifted = logits - m
    lse = jnp.log(jnp.sum(jnp.exp(shifted), axis=-1, keepdims=True))
    o_ref[...] = shifted - lse


@functools.partial(jax.jit, static_argnames=("block_b",))
def reseau_chiffres_forward(x, w1, b1, w2, b2, w3, b3, *, block_b=256):
    """x: [B, 1, 28, 28] or [B, 28, 28] float32 -> [B, 10] log-probs (f32)."""
    B = x.shape[0]
    x2d = x.reshape(B, _IN)

    # batch tile: multiple of 8 (f32 sublane), capped at block_b
    tb = min(block_b, _round_up(max(B, 1), 8))
    Bp = _round_up(B, tb)
    if Bp != B:
        x2d = jnp.pad(x2d, ((0, Bp - B), (0, 0)))
    x2d = x2d.astype(jnp.bfloat16)

    # cast weights to bf16 (MXU-native); keep biases in f32 (added post-accum).
    # zero-pad the narrow fc2/fc3 dims up to lane width 128.
    w1b = w1.astype(jnp.bfloat16)                                            # [784,128]
    b1f = b1.astype(jnp.float32)                                             # [1,128]
    w2b = jnp.pad(w2, ((0, 0), (0, _PAD - _H2))).astype(jnp.bfloat16)        # [128,128]
    b2f = jnp.pad(b2, ((0, 0), (0, _PAD - _H2))).astype(jnp.float32)         # [1,128]
    w3b = jnp.pad(w3, ((0, _PAD - _H2), (0, _PAD - _OUT))).astype(jnp.bfloat16)  # [128,128]
    b3f = jnp.pad(b3, ((0, 0), (0, _PAD - _OUT))).astype(jnp.float32)        # [1,128]

    n_blocks = Bp // tb

    const = lambda shape: pl.BlockSpec(shape, lambda i: tuple(0 for _ in shape))

    flops = 2 * Bp * (_IN * _H1 + _H1 * _PAD + _PAD * _PAD)
    bytes_accessed = (Bp * _IN * 2                                  # x (bf16)
                      + (_IN * _H1 + 2 * _PAD * _PAD) * 2           # weights (bf16)
                      + 3 * _PAD * 4                                # biases (f32)
                      + Bp * _PAD * 4)                              # out (f32)
    cost = pl.CostEstimate(flops=flops,
                           transcendentals=Bp * _PAD,
                           bytes_accessed=bytes_accessed)

    out_padded = pl.pallas_call(
        _mlp_kernel,
        out_shape=jax.ShapeDtypeStruct((Bp, _PAD), jnp.float32),
        grid=(n_blocks,),
        in_specs=[
            pl.BlockSpec((tb, _IN), lambda i: (i, 0)),   # x: streamed per step
            const((_IN, _H1)), const((1, _H1)),          # weights/biases: VMEM-resident
            const((_PAD, _PAD)), const((1, _PAD)),
            const((_PAD, _PAD)), const((1, _PAD)),
        ],
        out_specs=pl.BlockSpec((tb, _PAD), lambda i: (i, 0)),
        compiler_params=pltpu.CompilerParams(dimension_semantics=("parallel",)),
        cost_estimate=cost,
    )(x2d, w1b, b1f, w2b, b2f, w3b, b3f)

    return out_padded[:B, :_OUT]


def init_params(key):
    """Deterministic init matching nn.Linear shapes (weights stored as [in, out])."""
    k1, k2, k3, k4, k5, k6 = jax.random.split(key, 6)

    def lin(kw, kb, fan_in, fan_out):
        bound = 1.0 / jnp.sqrt(fan_in)
        w = jax.random.uniform(kw, (fan_in, fan_out), jnp.float32, -bound, bound)
        b = jax.random.uniform(kb, (1, fan_out), jnp.float32, -bound, bound)
        return w, b

    w1, b1 = lin(k1, k2, _IN, _H1)
    w2, b2 = lin(k3, k4, _H1, _H2)
    w3, b3 = lin(k5, k6, _H2, _OUT)
    return w1, b1, w2, b2, w3, b3


if __name__ == "__main__":
    key = jax.random.PRNGKey(0)
    kx, kp = jax.random.split(key)

    B = 8
    x = jax.random.normal(kx, (B, 1, 28, 28), jnp.float32)  # MNIST-like NCHW input
    params = init_params(kp)

    out = reseau_chiffres_forward(x, *params)
    out = jax.block_until_ready(out)
    assert out.shape == (B, 10)

    # pure-JAX f32 reference (kernel uses bf16 inputs/weights -> loose tolerance)
    w1, b1, w2, b2, w3, b3 = params
    xf = x.reshape(B, _IN)
    h1 = jnp.maximum(xf @ w1 + b1, 0.0)
    h2 = jnp.maximum(h1 @ w2 + b2, 0.0)
    logits = h2 @ w3 + b3
    ref = jax.nn.log_softmax(logits, axis=1)
    assert jnp.allclose(out, ref, atol=5e-2, rtol=5e-2), (
        float(jnp.max(jnp.abs(out - ref))))
    # rows must be valid log-prob distributions
    assert jnp.allclose(jnp.sum(jnp.exp(out), axis=1), 1.0, atol=1e-3)

    print("KERNEL_OK")
</pallas_src>

<mosaic_0001>
module attributes {stable_mosaic.version = 11 : i64} {
  func.func @_mlp_kernel(%arg0: i32, %arg1: memref<8x784xbf16, #tpu.memory_space<vmem>>, %arg2: memref<784x128xbf16, #tpu.memory_space<vmem>>, %arg3: memref<1x128xf32, #tpu.memory_space<vmem>>, %arg4: memref<128x128xbf16, #tpu.memory_space<vmem>>, %arg5: memref<1x128xf32, #tpu.memory_space<vmem>>, %arg6: memref<128x128xbf16, #tpu.memory_space<vmem>>, %arg7: memref<1x128xf32, #tpu.memory_space<vmem>>, %arg8: memref<8x128xf32, #tpu.memory_space<vmem>>) attributes {dimension_semantics = [#tpu.dimension_semantics<parallel>], iteration_bounds = array<i64: 1>, scalar_prefetch = 0 : i64, scratch_operands = 0 : i64, tpu.core_type = #tpu.core_type<tc>, window_params = [{transform_indices = @transform_0, window_bounds = array<i64: 8, 784>}, {pipeline_mode = #tpu.pipeline_mode<synchronous>, transform_indices = @transform_1, window_bounds = array<i64: 784, 128>}, {pipeline_mode = #tpu.pipeline_mode<synchronous>, transform_indices = @transform_2, window_bounds = array<i64: 1, 128>}, {pipeline_mode = #tpu.pipeline_mode<synchronous>, transform_indices = @transform_3, window_bounds = array<i64: 128, 128>}, {pipeline_mode = #tpu.pipeline_mode<synchronous>, transform_indices = @transform_4, window_bounds = array<i64: 1, 128>}, {pipeline_mode = #tpu.pipeline_mode<synchronous>, transform_indices = @transform_5, window_bounds = array<i64: 128, 128>}, {pipeline_mode = #tpu.pipeline_mode<synchronous>, transform_indices = @transform_6, window_bounds = array<i64: 1, 128>}, {transform_indices = @transform_7, window_bounds = array<i64: 8, 128>}]} {
    %c0 = arith.constant 0 : index
    %c0_0 = arith.constant 0 : index
    %0 = vector.load %arg1[%c0, %c0_0] : memref<8x784xbf16, #tpu.memory_space<vmem>>, vector<8x784xbf16>
    %c0_1 = arith.constant 0 : index
    %c0_2 = arith.constant 0 : index
    %1 = vector.load %arg2[%c0_1, %c0_2] : memref<784x128xbf16, #tpu.memory_space<vmem>>, vector<784x128xbf16>
    %cst = arith.constant dense<0.000000e+00> : vector<8x128xf32>
    %2 = tpu.matmul %0, %1, %cst {dimension_numbers = #tpu.dot_dimension_numbers<[1], [0], [0], [1], [0, 0, 1, 1], [], []>} : vector<8x784xbf16>, vector<784x128xbf16>, vector<8x128xf32> -> vector<8x128xf32>
    %c0_3 = arith.constant 0 : index
    %c0_4 = arith.constant 0 : index
    %3 = vector.load %arg3[%c0_3, %c0_4] : memref<1x128xf32, #tpu.memory_space<vmem>>, vector<1x128xf32>
    %4 = vector.broadcast %3 : vector<1x128xf32> to vector<8x128xf32>
    %5 = arith.addf %2, %4 : vector<8x128xf32>
    %cst_5 = arith.constant 0.000000e+00 : f32
    %6 = vector.broadcast %cst_5 : f32 to vector<8x128xf32>
    %7 = arith.maximumf %5, %6 : vector<8x128xf32>
    %8 = arith.truncf %7 : vector<8x128xf32> to vector<8x128xbf16>
    %c0_6 = arith.constant 0 : index
    %c0_7 = arith.constant 0 : index
    %9 = vector.load %arg4[%c0_6, %c0_7] : memref<128x128xbf16, #tpu.memory_space<vmem>>, vector<128x128xbf16>
    %cst_8 = arith.constant dense<0.000000e+00> : vector<8x128xf32>
    %10 = tpu.matmul %8, %9, %cst_8 {dimension_numbers = #tpu.dot_dimension_numbers<[1], [0], [0], [1], [0, 0, 1, 1], [], []>} : vector<8x128xbf16>, vector<128x128xbf16>, vector<8x128xf32> -> vector<8x128xf32>
    %c0_9 = arith.constant 0 : index
    %c0_10 = arith.constant 0 : index
    %11 = vector.load %arg5[%c0_9, %c0_10] : memref<1x128xf32, #tpu.memory_space<vmem>>, vector<1x128xf32>
    %12 = vector.broadcast %11 : vector<1x128xf32> to vector<8x128xf32>
    %13 = arith.addf %10, %12 : vector<8x128xf32>
    %cst_11 = arith.constant 0.000000e+00 : f32
    %14 = vector.broadcast %cst_11 : f32 to vector<8x128xf32>
    %15 = arith.maximumf %13, %14 : vector<8x128xf32>
    %16 = arith.truncf %15 : vector<8x128xf32> to vector<8x128xbf16>
    %c0_12 = arith.constant 0 : index
    %c0_13 = arith.constant 0 : index
    %17 = vector.load %arg6[%c0_12, %c0_13] : memref<128x128xbf16, #tpu.memory_space<vmem>>, vector<128x128xbf16>
    %cst_14 = arith.constant dense<0.000000e+00> : vector<8x128xf32>
    %18 = tpu.matmul %16, %17, %cst_14 {dimension_numbers = #tpu.dot_dimension_numbers<[1], [0], [0], [1], [0, 0, 1, 1], [], []>} : vector<8x128xbf16>, vector<128x128xbf16>, vector<8x128xf32> -> vector<8x128xf32>
    %c0_15 = arith.constant 0 : index
    %c0_16 = arith.constant 0 : index
    %19 = vector.load %arg7[%c0_15, %c0_16] : memref<1x128xf32, #tpu.memory_space<vmem>>, vector<1x128xf32>
    %20 = vector.broadcast %19 : vector<1x128xf32> to vector<8x128xf32>
    %21 = arith.addf %18, %20 : vector<8x128xf32>
    %22 = tpu.iota {dimensions = array<i32: 1>} : vector<8x128xi32>
    %c10_i32 = arith.constant 10 : i32
    %23 = vector.broadcast %c10_i32 : i32 to vector<8x128xi32>
    %24 = arith.cmpi slt, %22, %23 : vector<8x128xi32>
    %cst_17 = arith.constant -1.000000e+30 : f32
    %25 = vector.broadcast %cst_17 : f32 to vector<8x128xf32>
    %26 = arith.select %24, %21, %25 : vector<8x128xi1>, vector<8x128xf32>
    %cst_18 = arith.constant dense<0xFF800000> : vector<8xf32>
    %27 = vector.multi_reduction <maximumf>, %26, %cst_18 [1] : vector<8x128xf32> to vector<8xf32>
    %28 = vector.shape_cast %27 : vector<8xf32> to vector<8x1xf32>
    %29 = vector.broadcast %28 : vector<8x1xf32> to vector<8x128xf32>
    %30 = arith.subf %26, %29 : vector<8x128xf32>
    %31 = math.exp %30 : vector<8x128xf32>
    %cst_19 = arith.constant dense<0.000000e+00> : vector<8xf32>
    %32 = vector.multi_reduction <add>, %31, %cst_19 [1] : vector<8x128xf32> to vector<8xf32>
    %33 = vector.shape_cast %32 : vector<8xf32> to vector<8x1xf32>
    %34 = math.log %33 : vector<8x1xf32>
    %35 = vector.broadcast %34 : vector<8x1xf32> to vector<8x128xf32>
    %36 = arith.subf %30, %35 : vector<8x128xf32>
    %c0_20 = arith.constant 0 : index
    %c0_21 = arith.constant 0 : index
    %37 = vector.load %arg8[%c0_20, %c0_21] : memref<8x128xf32, #tpu.memory_space<vmem>>, vector<8x128xf32>
    tpu.vector_store %arg8[%c0_20, %c0_21], %36 {strides = array<i32>} : memref<8x128xf32, #tpu.memory_space<vmem>>, vector<8x128xf32>,
    return
  }
  func.func @transform_0(%arg0: i32) -> (i32, i32) {
    %c0_i32 = arith.constant 0 : i32
    %c0_i32_0 = arith.constant 0 : i32
    return %arg0, %c0_i32 : i32, i32
  }
  func.func @transform_1(%arg0: i32) -> (i32, i32) {
    %c0_i32 = arith.constant 0 : i32
    %c0_i32_0 = arith.constant 0 : i32
    %c0_i32_1 = arith.constant 0 : i32
    return %c0_i32, %c0_i32_0 : i32, i32
  }
  func.func @transform_2(%arg0: i32) -> (i32, i32) {
    %c0_i32 = arith.constant 0 : i32
    %c0_i32_0 = arith.constant 0 : i32
    %c0_i32_1 = arith.constant 0 : i32
    return %c0_i32, %c0_i32_0 : i32, i32
  }
  func.func @transform_3(%arg0: i32) -> (i32, i32) {
    %c0_i32 = arith.constant 0 : i32
    %c0_i32_0 = arith.constant 0 : i32
    %c0_i32_1 = arith.constant 0 : i32
    return %c0_i32, %c0_i32_0 : i32, i32
  }
  func.func @transform_4(%arg0: i32) -> (i32, i32) {
    %c0_i32 = arith.constant 0 : i32
    %c0_i32_0 = arith.constant 0 : i32
    %c0_i32_1 = arith.constant 0 : i32
    return %c0_i32, %c0_i32_0 : i32, i32
  }
  func.func @transform_5(%arg0: i32) -> (i32, i32) {
    %c0_i32 = arith.constant 0 : i32
    %c0_i32_0 = arith.constant 0 : i32
    %c0_i32_1 = arith.constant 0 : i32
    return %c0_i32, %c0_i32_0 : i32, i32
  }
  func.func @transform_6(%arg0: i32) -> (i32, i32) {
    %c0_i32 = arith.constant 0 : i32
    %c0_i32_0 = arith.constant 0 : i32
    %c0_i32_1 = arith.constant 0 : i32
    return %c0_i32, %c0_i32_0 : i32, i32
  }
  func.func @transform_7(%arg0: i32) -> (i32, i32) {
    %c0_i32 = arith.constant 0 : i32
    %c0_i32_0 = arith.constant 0 : i32
    return %arg0, %c0_i32 : i32, i32
  }
}

</mosaic_0001>

<bundles_post_ra>
// kernel: reseau_chiffres_forward.1
= control target key start
LH: loop header
LB: loop body
LE: loop exit
PB: predicated region body
PF: predicated region fallthrough
CT: control target
= control target key end

     0   :  { %v1185_v43 = vmov 0.0   ;;  %vm1186_vm0 = vmmov 0   ;;  %vm455_vm1 = vcmask 130048   ;;  %s1479_s0 = inlined_call_operand.vmem [shape: bf16[8,784], index: 0, kind: input, shape index: {}]   ;;  %s1480_s1 = inlined_call_operand.vmem [shape: bf16[784,128], index: 1, kind: input, shape index: {}]   ;;  %s1481_s2 = inlined_call_operand.vmem [shape: f32[1,128], index: 2, kind: input, shape index: {}]   ;;  %s1482_s3 = inlined_call_operand.vmem [shape: bf16[128,128], index: 3, kind: input, shape index: {}]   ;;  %s1483_s4 = inlined_call_operand.vmem [shape: f32[1,128], index: 4, kind: input, shape index: {}]   ;;  %s1484_s5 = inlined_call_operand.vmem [shape: bf16[128,128], index: 5, kind: input, shape index: {}]   ;;  %s1485_s6 = inlined_call_operand.vmem [shape: f32[1,128], index: 6, kind: input, shape index: {}]   ;;  %s1486_s7 = inlined_call_operand.hbm [shape: f32[8,128], index: 7, kind: output, shape index: {}]  }
   0x1   :  { %v1085_v0 = vld [vmem:[%s1480_s1 + $0x40] sm:$0xff]   ;;  %v1089_v4 = vld [vmem:[%s1480_s1 + $0x48] sm:$0xff]   ;;  %v1093_v8 = vld [vmem:[%s1480_s1 + $0x50] sm:$0xff]  }
   0x2   :  { %v1086_v1 = vld [vmem:[%s1480_s1] sm:$0xff]   ;;  %950 = vmatprep.subr.bf16.mxu0 %v1085_v0  ;;  %v1090_v5 = vld [vmem:[%s1480_s1 + $0x8] sm:$0xff]   ;;  %v1094_v9 = vld [vmem:[%s1480_s1 + $0x10] sm:$0xff]  }
   0x3   :  { %v1087_v2 = vld [vmem:[%s1480_s1 + $0xc0] sm:$0xff]   ;;  %951 = vmatpush3.bf16.msra.mxu0 %v1086_v1  ;;  %v1091_v6 = vld [vmem:[%s1480_s1 + $0xc8] sm:$0xff]   ;;  %v1095_v10 = vld [vmem:[%s1480_s1 + $0xd0] sm:$0xff]  }
   0x4   :  { %v1088_v3 = vld [vmem:[%s1480_s1 + $0x80] sm:$0xff]   ;;  %972 = vmatprep.subr.bf16.mxu1 %v1087_v2  ;;  %952 = vmatprep.subr.bf16.mxu0 %v1089_v4  ;;  %v1092_v7 = vld [vmem:[%s1480_s1 + $0x88] sm:$0xff]   ;;  %v1096_v11 = vld [vmem:[%s1480_s1 + $0x90] sm:$0xff]  }
   0x5   :  { %973 = vmatpush3.bf16.msra.mxu1 %v1088_v3  ;;  %v1097_v12 = vld [vmem:[%s1480_s1 + $0x58] sm:$0xff]   ;;  %v1101_v16 = vld [vmem:[%s1480_s1 + $0x60] sm:$0xff]   ;;  %v1105_v20 = vld [vmem:[%s1480_s1 + $0x68] sm:$0xff]  }
   0x6   :  { %974 = vmatprep.subr.bf16.mxu1 %v1091_v6  ;;  %v1098_v13 = vld [vmem:[%s1480_s1 + $0x18] sm:$0xff]   ;;  %v1102_v17 = vld [vmem:[%s1480_s1 + $0x20] sm:$0xff]   ;;  %v1106_v21 = vld [vmem:[%s1480_s1 + $0x28] sm:$0xff]  }
   0x7   :  { %953 = vmatpush3.bf16.msra.mxu0 %v1090_v5  ;;  %v1099_v14 = vld [vmem:[%s1480_s1 + $0xd8] sm:$0xff]   ;;  %v1103_v18 = vld [vmem:[%s1480_s1 + $0xe0] sm:$0xff]   ;;  %v1107_v22 = vld [vmem:[%s1480_s1 + $0xe8] sm:$0xff]  }
   0x8   :  { %954 = vmatprep.subr.bf16.mxu0 %v1093_v8  ;;  %v1100_v15 = vld [vmem:[%s1480_s1 + $0x98] sm:$0xff]   ;;  %v1104_v19 = vld [vmem:[%s1480_s1 + $0xa0] sm:$0xff]   ;;  %v1108_v23 = vld [vmem:[%s1480_s1 + $0xa8] sm:$0xff]  }
   0x9   :  { %975 = vmatpush3.bf16.msra.mxu1 %v1092_v7  ;;  %v1109_v24 = vld [vmem:[%s1480_s1 + $0x70] sm:$0xff]   ;;  %v1113_v28 = vld [vmem:[%s1480_s1 + $0x78] sm:$0xff]   ;;  %v28_v31 = vld [vmem:[%s1479_s0] sm:$0xff] }
   0xa   :  { %976 = vmatprep.subr.bf16.mxu1 %v1095_v10  ;;  %v1110_v25 = vld [vmem:[%s1480_s1 + $0x30] sm:$0xff]   ;;  %v1114_v29 = vld [vmem:[%s1480_s1 + $0x38] sm:$0xff]   ;;  %v875_v32 = vcombine.low %v28_v31, %v28_v31  ;;  %v876_v33 = vcombine.high %v28_v31, %v28_v31  ;;  %v1119_v35 = vld [vmem:[%s1480_s1 + $0x140] sm:$0xff]  }
   0xb   :  { %955 = vmatpush3.bf16.msra.mxu0 %v1094_v9  ;;  %v1111_v26 = vld [vmem:[%s1480_s1 + $0xf0] sm:$0xff]   ;;  %v1115_v30 = vld [vmem:[%s1480_s1 + $0xf8] sm:$0xff]   ;;  %v29_v36 = vld [vmem:[%s1479_s0 + $0x8] sm:$0xff] }
   0xc   :  { %956 = vmatprep.subr.bf16.mxu0 %v1097_v12  ;;  %v1112_v27 = vld [vmem:[%s1480_s1 + $0xb0] sm:$0xff]   ;;  %v1118_v34 = vld [vmem:[%s1480_s1 + $0xb8] sm:$0xff]   ;;  %491 = vmatprep.mubr.bf16.mxu0 %v876_v33  ;;  %v877_v37 = vcombine.low %v29_v36, %v29_v36  ;;  %v878_v38 = vcombine.high %v29_v36, %v29_v36  ;;  %v1122_v39 = vld [vmem:[%s1480_s1 + $0x100] sm:$0xff]  }
   0xd   :  { %977 = vmatpush3.bf16.msra.mxu1 %v1096_v11  ;;  %v1123_v40 = vld [vmem:[%s1480_s1 + $0x148] sm:$0xff]   ;;  %v1125_v42 = vld [vmem:[%s1480_s1 + $0x150] sm:$0xff]   ;;  %v1127_v45 = vld [vmem:[%s1480_s1 + $0x158] sm:$0xff]  }
   0xe   :  { %978 = vmatprep.subr.bf16.mxu1 %v1099_v14  ;;  %531 = vmatprep.mubr.bf16.mxu1 %v878_v38  ;;  %v1124_v41 = vld [vmem:[%s1480_s1 + $0x108] sm:$0xff]   ;;  %v1126_v44 = vld [vmem:[%s1480_s1 + $0x110] sm:$0xff]   ;;  %v1128_v46 = vld [vmem:[%s1480_s1 + $0x118] sm:$0xff]  }
   0xf   :  { %957 = vmatpush3.bf16.msra.mxu0 %v1098_v13  ;;  %v1129_v47 = vld [vmem:[%s1480_s1 + $0x160] sm:$0xff]   ;;  %v1131_v49 = vld [vmem:[%s1480_s1 + $0x168] sm:$0xff]   ;;  %v30_v51 = vld [vmem:[%s1479_s0 + $0x10] sm:$0xff] }
  0x10   :  { %958 = vmatprep.subr.bf16.mxu0 %v1101_v16  ;;  %v1130_v48 = vld [vmem:[%s1480_s1 + $0x120] sm:$0xff]   ;;  %v1132_v52 = vld [vmem:[%s1480_s1 + $0x128] sm:$0xff]   ;;  %v880_v53 = vcombine.high %v30_v51, %v30_v51  ;;  %v1140_v54 = vld [vmem:[%s1479_s0 + $0x18] ss:$0 sps:$4 sm:$0xff]  }
  0x11   :  { %979 = vmatpush3.bf16.msra.mxu1 %v1100_v15  ;;  %v1137_v50 = vld [vmem:[%s1480_s1 + $0x180] sm:$0xff]   ;;  %v1133_v55 = vld [vmem:[%s1480_s1 + $0x170] sm:$0xff]   ;;  %v1135_v57 = vld [vmem:[%s1480_s1 + $0x178] sm:$0xff]  }
  0x12   :  { %980 = vmatprep.subr.bf16.mxu1 %v1103_v18  ;;  %v1134_v56 = vld [vmem:[%s1480_s1 + $0x130] sm:$0xff]   ;;  %v1136_v58 = vld [vmem:[%s1480_s1 + $0x138] sm:$0xff]  }
  0x13   :  { %959 = vmatpush3.bf16.msra.mxu0 %v1102_v17 }
  0x14   :  { %960 = vmatprep.subr.bf16.mxu0 %v1105_v20 }
  0x15   :  { %981 = vmatpush3.bf16.msra.mxu1 %v1104_v19 }
  0x16   :  { %982 = vmatprep.subr.bf16.mxu1 %v1107_v22 }
  0x17   :  { %961 = vmatpush3.bf16.msra.mxu0 %v1106_v21 }
  0x18   :  { %962 = vmatprep.subr.bf16.mxu0 %v1109_v24 }
  0x19   :  { %983 = vmatpush3.bf16.msra.mxu1 %v1108_v23 }
  0x1a   :  { %984 = vmatprep.subr.bf16.mxu1 %v1111_v26 }
  0x1b   :  { %963 = vmatpush3.bf16.msra.mxu0 %v1110_v25 }
  0x1c   :  { %964 = vmatprep.subr.bf16.mxu0 %v1113_v28 }
  0x1d   :  { %985 = vmatpush3.bf16.msra.mxu1 %v1112_v27 }
  0x1e   :  { %986 = vmatprep.subr.bf16.mxu1 %v1115_v30 }
  0x1f   :  { %965 = vmatpush3.bf16.msra.mxu0 %v1114_v29 }
  0x20   :  { %994 = vmatprep.subr.bf16.mxu0 %v1119_v35 }
  0x21   :  { %987 = vmatpush3.bf16.msra.mxu1 %v1118_v34 }
  0x22   :  { %492 = vmatmul.mubr.bf16.vlgmr.msra.gmra.mrb[0].mxu0 %v875_v32  ;;  %1036 = vmatprep.subr.bf16.mxu1 %v1185_v43 }
  0x23   :  { %995 = vmatpush3.bf16.msra.mxu0 %v1122_v39  ;;  %571 = vmatprep.mubr.bf16.mxu0 %v880_v53 }
  0x24   :  { %532 = vmatmul.mubr.bf16.vlgmr.msra.gmra.mrb[0].mxu1 %v877_v37  ;;  %996 = vmatprep.subr.bf16.mxu0 %v1123_v40 }
  0x25   :  { %1038 = vmatprep.mubr.msk.bf16.mxu1 %vm1186_vm0, %v1185_v43  ;;  %1037 = vmatpush3.bf16.msra.mxu1 %v1137_v50 }
  0x26   :  { %1042 = vmatprep.subr.bf16.mxu1 %v1185_v43 }
  0x27   :  { %997 = vmatpush3.bf16.msra.mxu0 %v1124_v41 }
  0x28   :  { %998 = vmatprep.subr.bf16.mxu0 %v1125_v42 }
  0x2b   :  { %999 = vmatpush3.bf16.msra.mxu0 %v1126_v44 }
  0x2c   :  { %1000 = vmatprep.subr.bf16.mxu0 %v1127_v45  ;;  %1039 = vmatmul.mubr.msk.bf16.vlgmr.msra.gmra.mrb[4].mxu1 %vm455_vm1, %v1140_v54 }
  0x2d   :  { %1058 = vmatprep.mubr.msk.bf16.mxu1 %vm1186_vm0, %v1185_v43 }
  0x2f   :  { %1001 = vmatpush3.bf16.msra.mxu0 %v1128_v46 }
  0x30   :  { %1002 = vmatprep.subr.bf16.mxu0 %v1129_v47 }
  0x33   :  { %1003 = vmatpush3.bf16.msra.mxu0 %v1130_v48 }
  0x34   :  { %1004 = vmatprep.subr.bf16.mxu0 %v1131_v49 }
  0x37   :  { %1005 = vmatpush3.bf16.msra.mxu0 %v1132_v52 }
  0x38   :  { %1006 = vmatprep.subr.bf16.mxu0 %v1133_v55 }
  0x3b   :  { %1007 = vmatpush3.bf16.msra.mxu0 %v1134_v56 }
  0x3c   :  { %1008 = vmatprep.subr.bf16.mxu0 %v1135_v57 }
  0x3d   :  { %12 = vsyncpa [#allocation3], 0  ;;  %v879_v59 = vcombine.low %v30_v51, %v30_v51  ;;  %v1141_v60 = vld [vmem:[%s1482_s3] sm:$0xff]   ;;  %v1142_v61 = vld [vmem:[%s1482_s3 + $0x8] sm:$0xff]   ;;  %v845_v47 = vlaneseq }
  0x3e   :  { %1043 = vmatpush3.bf16.msra.mxu1 %v1141_v60  ;;  %v1143_v62 = vld [vmem:[%s1482_s3 + $0x10] sm:$0xff]   ;;  %v1144_v63 = vld [vmem:[%s1482_s3 + $0x18] sm:$0xff]   ;;  %v1145_v0 = vld [vmem:[%s1482_s3 + $0x20] sm:$0xff]  }
  0x3f   :  { %1009 = vmatpush3.bf16.msra.mxu0 %v1136_v58  ;;  %1044 = vmatprep.subr.bf16.mxu1 %v1185_v43  ;;  %v1146_v1 = vld [vmem:[%s1482_s3 + $0x28] sm:$0xff]   ;;  %v1147_v2 = vld [vmem:[%s1482_s3 + $0x30] sm:$0xff]   ;;  %v1148_v3 = vld [vmem:[%s1482_s3 + $0x38] sm:$0xff]   ;;  %v846_v48 = vand.u32 127, %v845_v47 }
  0x40   :  { %1062 = vmatprep.subr.bf16.mxu0 %v1185_v43  ;;  %v1149_v4 = vld [vmem:[%s1484_s5] sm:$0xff]   ;;  %v1150_v5 = vld [vmem:[%s1484_s5 + $0x8] sm:$0xff]   ;;  %v1151_v6 = vld [vmem:[%s1484_s5 + $0x10] sm:$0xff]  }
  0x41   :  { %v1152_v7 = vld [vmem:[%s1484_s5 + $0x18] sm:$0xff]   ;;  %v1153_v8 = vld [vmem:[%s1484_s5 + $0x20] sm:$0xff]   ;;  %v1154_v9 = vld [vmem:[%s1484_s5 + $0x28] sm:$0xff]   ;;  %vm847_vm2 = vcmp.lt.s32.totalorder %v846_v48, 10 }
  0x42   :  { %572 = vmatmul.mubr.bf16.vlgmr.msra.gmra.mrb[4].mxu0 %v879_v59  ;;  %1045 = vmatpush3.bf16.msra.mxu1 %v1142_v61  ;;  %v874_v11 = vld [vmem:[%s1481_s2] ss:$0 sm:$0xff]  ;;  %v1155_v36 = vld [vmem:[%s1484_s5 + $0x30] sm:$0xff]   ;;  %v1156_v37 = vld [vmem:[%s1484_s5 + $0x38] sm:$0xff]  }
  0x43   :  { %1078 = vmatprep.mubr.msk.bf16.mxu0 %vm1186_vm0, %v1185_v43  ;;  %1046 = vmatprep.subr.bf16.mxu1 %v1185_v43  ;;  %v932_v38 = vld [vmem:[%s1483_s4] ss:$0 sm:$0xff]  ;;  %s1187_s4 = smov [#allocation2]  }
  0x44   :  { %1063 = vmatpush3.bf16.msra.mxu0 %v1149_v4  ;;  %s866_s5 = sshll.u32 %s1187_s4, 4  ;;  %s867_s5 = int_to_ptr.vmem [resolvable:$true] %s866_s5 }
  0x45   :  { %1064 = vmatprep.subr.bf16.mxu0 %v1185_v43  ;;  %p1166_p1 = scmp.lt.s32.totalorder %s867_s5, %s867_s5 }
  0x46   :  { %1047 = vmatpush3.bf16.msra.mxu1 %v1143_v62 }
  0x47   :  { %1048 = vmatprep.subr.bf16.mxu1 %v1185_v43 }
  0x48   :  { %1065 = vmatpush3.bf16.msra.mxu0 %v1150_v5 }
  0x49   :  { %1066 = vmatprep.subr.bf16.mxu0 %v1185_v43 }
  0x4a   :  { %1049 = vmatpush3.bf16.msra.mxu1 %v1144_v63 }
  0x4b   :  { %1050 = vmatprep.subr.bf16.mxu1 %v1185_v43 }
  0x4c   :  { %1067 = vmatpush3.bf16.msra.mxu0 %v1151_v6 }
  0x4d   :  { %1068 = vmatprep.subr.bf16.mxu0 %v1185_v43 }
  0x4e   :  { %1051 = vmatpush3.bf16.msra.mxu1 %v1145_v0 }
  0x4f   :  { %1052 = vmatprep.subr.bf16.mxu1 %v1185_v43 }
  0x50   :  { %1069 = vmatpush3.bf16.msra.mxu0 %v1152_v7 }
  0x51   :  { %1070 = vmatprep.subr.bf16.mxu0 %v1185_v43 }
  0x52   :  { %1053 = vmatpush3.bf16.msra.mxu1 %v1146_v1 }
  0x53   :  { %1054 = vmatprep.subr.bf16.mxu1 %v1185_v43 }
  0x54   :  { %1071 = vmatpush3.bf16.msra.mxu0 %v1153_v8 }
  0x55   :  { %1072 = vmatprep.subr.bf16.mxu0 %v1185_v43 }
  0x56   :  { %1055 = vmatpush3.bf16.msra.mxu1 %v1147_v2 }
  0x57   :  { %1056 = vmatprep.subr.bf16.mxu1 %v1185_v43 }
  0x58   :  { %1073 = vmatpush3.bf16.msra.mxu0 %v1154_v9 }
  0x59   :  { %1074 = vmatprep.subr.bf16.mxu0 %v1185_v43 }
  0x5a   :  { %1057 = vmatpush3.bf16.msra.mxu1 %v1148_v3 }
  0x5c   :  { %1075 = vmatpush3.bf16.msra.mxu0 %v1155_v36 }
  0x5d   :  { %1076 = vmatprep.subr.bf16.mxu0 %v1185_v43  ;;  %v941_v43 = vld [vmem:[%s1485_s6] ss:$0 sm:$0xff]  ;;  %s1161_s6 = scalar_lea.vmem %s867_s5, 128 }
  0x5e   :  { %p1162_p0 = scmp.ne.s32.totalorder %s867_s5, %s1161_s6  ;;  %p1167_p2 = scmp.lt.s32.totalorder %s1161_s6, %s1161_s6 }
  0x60   :  { %1077 = vmatpush3.bf16.msra.mxu0 %v1156_v37  ;;  %p1168_p3 = por %p1167_p2, %p1166_p1 }
  0x62   :  { %p1169_p4 = pnand %p1168_p3, %p1162_p0 }
  0xf5   :  { %v966_v10 = vpop.f32.mrb[0].mxu0 }
  0xf6   :  { %v967_v12 = vpop.f32.mrb[1].mxu0 }
  0xf7   :  { %v968_v13 = vadd.f32 %v967_v12, %v966_v10  ;;  %v969_v14 = vpop.f32.mrb[2].mxu0  ;;  %v988_v15 = vpop.f32.mrb[0].mxu1 }
  0xf8   :  { %v970_v16 = vpop.f32.mrb[3].mxu0  ;;  %v989_v17 = vpop.f32.mrb[1].mxu1 }
  0xf9   :  { %v494_v18 = vadd.f32 %v968_v13, %v874_v11  ;;  %v990_v19 = vadd.f32 %v989_v17, %v988_v15  ;;  %v991_v20 = vpop.f32.mrb[2].mxu1 }
  0xfa   :  { %v992_v21 = vpop.f32.mrb[3].mxu1 }
  0xfb   :  { %v534_v22 = vadd.f32 %v990_v19, %v494_v18 }
  0xff   :  { %v613_v23 = vpop.f32.mrb[4].mxu1 }
 0x100   :  { %v1040_v24 = vpop.f32.mrb[5].mxu1 }
 0x101   :  { %v616_v25 = vpop.f32.mrb[6].mxu1 }
 0x102   :  { %v1041_v26 = vpop.f32.mrb[7].mxu1 }
 0x115   :  { %v1010_v27 = vpop.f32.mrb[4].mxu0 }
 0x116   :  { %v1011_v28 = vpop.f32.mrb[5].mxu0 }
 0x117   :  { %v1012_v29 = vadd.f32 %v1011_v28, %v1010_v27  ;;  %v1013_v30 = vpop.f32.mrb[6].mxu0 }
 0x118   :  { %v1014_v31 = vpop.f32.mrb[7].mxu0 }
 0x119   :  { %v574_v32 = vadd.f32 %v1012_v29, %v534_v22 }
 0x11b   :  { %v614_v33 = vadd.f32 %v613_v23, %v574_v32 }
 0x11d   :  { %v619_v34 = vmax.f32 %v614_v33, 0.0 }
 0x11f   :  { %v620_v35 = vpack.c.bf16 %v619_v34, %v619_v34 }
 0x121   :  { %1059 = vmatmul.mubr.bf16.vlgmr.msra.gmra.mrb[8].mxu1 %v620_v35 }
 0x1f4   :  { %v726_v39 = vpop.f32.mrb[8].mxu1 }
 0x1f5   :  { %v727_v40 = vadd.f32 %v932_v38, %v726_v39  ;;  %v1060_v41 = vpop.f32.mrb[9].mxu1 }
 0x1f6   :  { %v729_v42 = vpop.f32.mrb[10].mxu1 }
 0x1f7   :  { %v732_v44 = vmax.f32 %v727_v40, 0.0  ;;  %v1061_v45 = vpop.f32.mrb[11].mxu1 }
 0x1f9   :  { %v733_v46 = vpack.c.bf16 %v732_v44, %v732_v44 }
 0x1fb   :  { %1079 = vmatmul.mubr.bf16.vlgmr.msra.gmra.mrb[8].mxu0 %v733_v46 }
 0x2ce   :  { %v839_v49 = vpop.f32.mrb[8].mxu0 }
 0x2cf   :  { %v840_v50 = vadd.f32 %v941_v43, %v839_v49  ;;  %v1080_v51 = vpop.f32.mrb[9].mxu0 }
 0x2d0   :  { %v842_v52 = vpop.f32.mrb[10].mxu0 }
 0x2d1   :  { %v1081_v53 = vpop.f32.mrb[11].mxu0  ;;  %v848_v54 = vsel %vm847_vm2, %v840_v50, -1e+30 }
 0x2d2   :  { %849 = vmax.xlane.f32.xlu0 %v848_v54 }
 0x35f   :  { %v850_v55 = vpop.xlane.xlu0 %849 }
 0x360   :  { %v851_v56 = vsub.f32 %v848_v54, %v850_v55 }
 0x362   :  { %v852_v57 = vmul.f32 1.442695, %v851_v56 }
 0x364   :  { %1157 = vpow2.f32 %v852_v57 }
 0x36e   :  { %v1158_v58 = vpop.eup %1157 }
 0x36f   :  { %854 = vadd.xlane.f32.xlu0 %v1158_v58 }
 0x3fc   :  { %v855_v59 = vpop.xlane.xlu0 %854 }
 0x3fd   :  { %1159 = vlog2.f32 %v855_v59 }
 0x407   :  { %v1160_v60 = vpop.eup %1159 }
 0x408   :  { %v857_v61 = vmul.f32 0.6931472, %v1160_v60 }
 0x40a   :  { %v858_v62 = vsub.f32 %v851_v56, %v857_v61 }
 0x40c   :  { %859 = vst [vmem:[#allocation2] sm:$0xff] %v858_v62 }
 0x40d   :  { %1172 = shalt.err (!%p1169_p4)
}
 0x40e   :  { %s1173_s26 = scalar_lea.hbm %s1486_s7, 128 }
 0x40f   :  { %p1174_p5 = scmp.ne.s32.totalorder %s1486_s7, %s1173_s26  ;;  %p1177_p6 = scmp.lt.u32.totalorder %s1173_s26, %s1486_s7 }
 0x411   :  { %p1179_p7 = pnand %p1177_p6, %p1174_p5 }
 0x413   :  { %1182 = shalt.err (!%p1179_p7)
}
 0x414   :  { %869 = dma.vmem_to_hbm [thread:$0]  %s867_s5, 128, %s1486_s7, [#allocation3]  }
 0x415   :  { %1183 = dma.done.wait [#allocation3], 128  }
 0x416   :  { %1184 = vsyncadd [#allocation3], 4294967168 }
 0x417   :  { %873 = vsyncpa [#allocation3], 1 }

</bundles_post_ra>
